<compile_context>
chip_gen: v6e
topology: v6e:2x2x1
jax: 0.10.0
libtpu: 0.0.40
codegen_flags: <defaults>
</compile_context>

<pallas_src>
import functools
import math

import jax
import jax.numpy as jnp
from jax.experimental import pallas as pl
from jax.experimental.pallas import tpu as pltpu


def _vmem_limit_bytes():
    # Queried at trace time (per call), not at import: 56 MiB budget on v7x's
    # 64 MiB, ~100 MiB on v5e/v6e's 128 MiB.
    try:
        cap = pltpu.get_tpu_info().vmem_capacity_bytes
    except Exception:
        cap = 64 << 20  # conservative fallback (v7x-sized)
    return int(min(cap - (8 << 20), 100 << 20))


def _round_up(x, m):
    return ((x + m - 1) // m) * m


def _pick_tile(n, candidates=(256, 128, 64, 32, 16, 8)):
    for c in candidates:
        if n % c == 0:
            return c
    return n  # full-extent fallback (allowed: equals the array dim)


# ----------------------------------------------------------------------------
# Plain Linear kernel (input_projection / output_projection, fp32 — these run
# OUTSIDE the torch autocast region), M-tiled grid, lane-dense padded output.
# ----------------------------------------------------------------------------
def _linear_kernel(x_ref, w_ref, b_ref, o_ref):
    # x: (tm, K), w: (K, Np) pre-transposed, b: (1, Np)
    o_ref[...] = (
        jnp.dot(x_ref[...], w_ref[...], preferred_element_type=jnp.float32)
        + b_ref[...]
    )


def linear(x, w, b):
    """y = x @ w.T + b with w in torch nn.Linear layout (N, K), fp32."""
    M, K = x.shape
    N = w.shape[0]

    # Lane-dense output: pad N to a multiple of 128 so every store is a full
    # (unmasked) vst; the wrapper slices the padding off afterwards.
    Np = _round_up(N, 128)
    w_t = jnp.zeros((K, Np), jnp.float32).at[:, :N].set(w.T)
    b_p = jnp.zeros((1, Np), jnp.float32).at[:, :N].set(b.reshape(1, N))

    # M tiling: 512-row tiles when M is large, otherwise one 8-aligned tile.
    # Pad M so the grid divides exactly (no un-pipelined giant fallback block,
    # no reliance on out-of-bounds padding semantics).
    tm = 512 if M >= 512 else _round_up(M, 8)
    Mp = _round_up(M, tm)
    x_p = x if Mp == M else jnp.zeros((Mp, K), x.dtype).at[:M].set(x)

    out = pl.pallas_call(
        _linear_kernel,
        out_shape=jax.ShapeDtypeStruct((Mp, Np), jnp.float32),
        grid=(Mp // tm,),
        in_specs=[
            pl.BlockSpec((tm, K), lambda i: (i, 0)),
            # Constant-index weight/bias: single pipeline buffer.
            pl.BlockSpec((K, Np), lambda i: (0, 0), pipeline_mode=pl.Buffered(1)),
            pl.BlockSpec((1, Np), lambda i: (0, 0), pipeline_mode=pl.Buffered(1)),
        ],
        out_specs=pl.BlockSpec((tm, Np), lambda i: (i, 0)),
        compiler_params=pltpu.CompilerParams(
            dimension_semantics=("parallel",),
            vmem_limit_bytes=_vmem_limit_bytes()),
    )(x_p, w_t, b_p)
    return out[:M, :N]


# ----------------------------------------------------------------------------
# Fused FastSelfAttentionBlock kernel (flash-style online softmax).
# Grid = (B, num_q_tiles, nhead, num_kv_tiles); the last two axes are carried
# ("arbitrary"): per-head online softmax over kv tiles, head merge + residual +
# LayerNorm + FFN + LayerNorm at the final (head, kv) step of each query tile.
# ----------------------------------------------------------------------------
def _block_kernel(xq_ref, xkv_ref,
                  wq_ref, bq_ref, wk_ref, bk_ref, wv_ref, bv_ref,
                  g1_ref, be1_ref, w1_ref, bb1_ref, w2_ref, bb2_ref,
                  g2_ref, be2_ref,
                  o_ref,
                  q_scr, m_scr, l_scr, acc_scr,
                  *, nhead):
    bf16 = jnp.bfloat16
    h = pl.program_id(2)
    ki = pl.program_id(3)
    last_k = pl.num_programs(3) - 1

    xq = xq_ref[0]          # (tq, D) fp32 (query rows; also the residual)
    xkv = xkv_ref[0]        # (tk, D) fp32 (key/value rows)

    # Per-head K / V projection for this kv tile.  Weights are pre-split per
    # head at trace time ((H, D, hd) stacks) and selected with a dynamic
    # first-axis ref index -> no in-kernel lane slicing / head relayout.
    k_h = (jnp.dot(xkv.astype(bf16), wk_ref[h],
                   preferred_element_type=jnp.float32) + bk_ref[h]).astype(bf16)
    v_h = (jnp.dot(xkv.astype(bf16), wv_ref[h],
                   preferred_element_type=jnp.float32) + bv_ref[h]).astype(bf16)

    @pl.when(ki == 0)
    def _init():
        # Q for this (query tile, head): computed once, reused across kv tiles.
        # 1/sqrt(head_dim) is folded into wq / bq at trace time.
        q = jnp.dot(xq.astype(bf16), wq_ref[h],
                    preferred_element_type=jnp.float32) + bq_ref[h]
        q_scr[...] = q.astype(bf16)
        m_scr[...] = jnp.full(m_scr.shape, -jnp.inf, m_scr.dtype)
        l_scr[...] = jnp.zeros(l_scr.shape, l_scr.dtype)
        acc_scr[h] = jnp.zeros(acc_scr.shape[1:], acc_scr.dtype)

    # Online softmax update: scores only ever (tq, tk), never (H, L, L).
    s = jnp.einsum('qd,kd->qk', q_scr[...], k_h,
                   preferred_element_type=jnp.float32)
    m_prev = m_scr[...]
    m_new = jnp.maximum(m_prev, jnp.max(s, axis=-1, keepdims=True))
    alpha = jnp.exp(m_prev - m_new)
    p = jnp.exp(s - m_new)
    l_scr[...] = alpha * l_scr[...] + jnp.sum(p, axis=-1, keepdims=True)
    acc_scr[h] = alpha * acc_scr[h] + jnp.dot(p.astype(bf16), v_h,
                                              preferred_element_type=jnp.float32)
    m_scr[...] = m_new

    @pl.when(ki == last_k)
    def _finish_head():
        # Normalize this head's context (EUP reciprocal: free slot).
        acc_scr[h] = acc_scr[h] * pl.reciprocal(l_scr[...], approx=True)

    @pl.when(jnp.logical_and(h == nhead - 1, ki == last_k))
    def _finalize():
        # Merge heads (head-major feature order, matching torch merge_heads):
        # a single lane concat once per query tile.
        # TODO(synk): pltpu.einshape('hqd->q(hd)') once grouped-axis syntax is
        # confirmed on this toolchain.
        attn = jnp.concatenate([acc_scr[i] for i in range(nhead)], axis=-1)

        # residual + LayerNorm (fp32, eps = 1e-5)
        h1 = xq + attn
        mu1 = jnp.mean(h1, axis=-1, keepdims=True)
        var1 = jnp.mean((h1 - mu1) ** 2, axis=-1, keepdims=True)
        x1 = (h1 - mu1) * jax.lax.rsqrt(var1 + 1e-5) * g1_ref[...] + be1_ref[...]

        # FFN: Linear(D,4D) -> ReLU -> Linear(4D,D), bf16 matmuls, f32 acc.
        f = jnp.dot(x1.astype(bf16), w1_ref[...],
                    preferred_element_type=jnp.float32) + bb1_ref[...]
        f = jnp.maximum(f, 0.0)
        f = jnp.dot(f.astype(bf16), w2_ref[...],
                    preferred_element_type=jnp.float32) + bb2_ref[...]

        # residual + LayerNorm
        h2 = x1 + f
        mu2 = jnp.mean(h2, axis=-1, keepdims=True)
        var2 = jnp.mean((h2 - mu2) ** 2, axis=-1, keepdims=True)
        o_ref[0] = ((h2 - mu2) * jax.lax.rsqrt(var2 + 1e-5)
                    * g2_ref[...] + be2_ref[...])


def attention_block(x, layer_params, nhead):
    B, L, D = x.shape
    hd = D // nhead
    (w_qkv, b_qkv, g1, be1, w1, bb1, w2, bb2, g2, be2) = layer_params
    bf16 = jnp.bfloat16
    scale = 1.0 / math.sqrt(hd)

    # Trace-time weight prep (zero runtime cost):
    #  * qkv weight split into per-head (H, D, hd) stacks -> no in-kernel
    #    head split of activations,
    #  * 1/sqrt(head_dim) folded into the Q weights & bias,
    #  * autocast-matmul weights pre-transposed + pre-cast to bf16 (halves the
    #    weight DMA traffic and removes in-kernel transposes/casts).
    def per_head(w_rows, b_rows, s=1.0):
        w_t = (w_rows.T * s).astype(bf16)                      # (D_in, D_out)
        w_h = w_t.reshape(D, nhead, hd).transpose(1, 0, 2)     # (H, D_in, hd)
        b_h = (b_rows * s).astype(jnp.float32).reshape(nhead, 1, hd)
        return w_h, b_h

    wq_h, bq_h = per_head(w_qkv[:D], b_qkv[:D], scale)
    wk_h, bk_h = per_head(w_qkv[D:2 * D], b_qkv[D:2 * D])
    wv_h, bv_h = per_head(w_qkv[2 * D:], b_qkv[2 * D:])
    w1_t = w1.T.astype(bf16)          # (D, 4D)
    w2_t = w2.T.astype(bf16)          # (4D, D)

    tq = _pick_tile(L)
    tk = _pick_tile(L)
    grid = (B, L // tq, nhead, L // tk)

    def const(shape, single_buffer=False):
        nd = len(shape)
        kw = {"pipeline_mode": pl.Buffered(1)} if single_buffer else {}
        return pl.BlockSpec(shape, lambda b, qi, h, ki: (0,) * nd, **kw)

    kernel = functools.partial(_block_kernel, nhead=nhead)

    return pl.pallas_call(
        kernel,
        out_shape=jax.ShapeDtypeStruct((B, L, D), jnp.float32),
        grid=grid,
        in_specs=[
            pl.BlockSpec((1, tq, D), lambda b, qi, h, ki: (b, qi, 0)),  # query rows
            pl.BlockSpec((1, tk, D), lambda b, qi, h, ki: (b, ki, 0)),  # kv rows
            const((nhead, D, hd), True), const((nhead, 1, hd)),   # Wq (scaled), bq (scaled)
            const((nhead, D, hd), True), const((nhead, 1, hd)),   # Wk, bk
            const((nhead, D, hd), True), const((nhead, 1, hd)),   # Wv, bv
            const((1, D)), const((1, D)),                         # attn_norm gamma/beta
            const((D, 4 * D), True), const((1, 4 * D)),           # ffn w1^T (bf16), b1
            const((4 * D, D), True), const((1, D)),               # ffn w2^T (bf16), b2
            const((1, D)), const((1, D)),                         # ffn_norm gamma/beta
        ],
        out_specs=pl.BlockSpec((1, tq, D), lambda b, qi, h, ki: (b, qi, 0)),
        scratch_shapes=[
            pltpu.VMEM((tq, hd), bf16),               # Q for current (tile, head)
            pltpu.VMEM((tq, 1), jnp.float32),         # online-softmax running max
            pltpu.VMEM((tq, 1), jnp.float32),         # online-softmax running denom
            pltpu.VMEM((nhead, tq, hd), jnp.float32),  # per-head context accumulator
        ],
        compiler_params=pltpu.CompilerParams(
            dimension_semantics=("parallel", "parallel", "arbitrary", "arbitrary"),
            vmem_limit_bytes=_vmem_limit_bytes()),
    )(x, x, wq_h, bq_h, wk_h, bk_h, wv_h, bv_h,
      g1.reshape(1, D), be1.reshape(1, D), w1_t, bb1.reshape(1, -1),
      w2_t, bb2.reshape(1, D), g2.reshape(1, D), be2.reshape(1, D))


# ----------------------------------------------------------------------------
# Parameter construction (deterministic, synthetic, torch nn.Linear layouts)
# ----------------------------------------------------------------------------
def init_params(key, token_encoder_dim, d_model, output_dim, nhead, num_layers):
    keys = jax.random.split(key, 4 + num_layers)

    def w(k, shape, scale=0.05):
        return jax.random.normal(k, shape, jnp.float32) * scale

    params = {
        "in_w": w(keys[0], (d_model, token_encoder_dim)),
        "in_b": w(keys[1], (d_model,)),
        "out_w": w(keys[2], (output_dim, d_model)),
        "out_b": w(keys[3], (output_dim,)),
        "layers": [],
    }
    for i in range(num_layers):
        ks = jax.random.split(keys[4 + i], 6)
        params["layers"].append((
            w(ks[0], (3 * d_model, d_model)),          # qkv weight
            w(ks[1], (3 * d_model,)),                  # qkv bias
            jnp.ones((d_model,), jnp.float32),         # attn_norm gamma
            jnp.zeros((d_model,), jnp.float32),        # attn_norm beta
            w(ks[2], (4 * d_model, d_model)),          # ffn w1
            w(ks[3], (4 * d_model,)),                  # ffn b1
            w(ks[4], (d_model, 4 * d_model)),          # ffn w2
            w(ks[5], (d_model,)),                      # ffn b2
            jnp.ones((d_model,), jnp.float32),         # ffn_norm gamma
            jnp.zeros((d_model,), jnp.float32),        # ffn_norm beta
        ))
    return params


# ----------------------------------------------------------------------------
# Encoder forward (glue in plain JAX, hot paths in Pallas)
# ----------------------------------------------------------------------------
def fast_self_attention_encoder(x, params, *, token_encoder_dim, nhead):
    B, total_features = x.shape
    L = total_features // token_encoder_dim
    x = x.reshape(B, L, token_encoder_dim)

    # input projection (fp32 — outside the autocast region in the torch module)
    d_model = params["in_w"].shape[0]
    h = linear(x.reshape(B * L, token_encoder_dim),
               params["in_w"], params["in_b"]).reshape(B, L, d_model)

    # transformer blocks (one fused Pallas kernel per layer)
    # TODO(synk): stack per-layer weights behind a leading layer grid axis
    # (PrefetchScalarGridSpec) so h stays in VMEM across layers instead of one
    # HBM round trip per layer.
    for layer_params in params["layers"]:
        h = attention_block(h, layer_params, nhead)

    # output projection (fp32) + flatten
    output_dim = params["out_w"].shape[0]
    out = linear(h.reshape(B * L, d_model),
                 params["out_w"], params["out_b"]).reshape(B, L, output_dim)
    return out.reshape(B, L * output_dim)


# ----------------------------------------------------------------------------
# Pure-JAX reference (fp32) for a correctness sanity check.
# ----------------------------------------------------------------------------
def _reference_forward(x, params, token_encoder_dim, nhead):
    B, total = x.shape
    L = total // token_encoder_dim

    def ln(t, g, b):
        mu = t.mean(-1, keepdims=True)
        var = ((t - mu) ** 2).mean(-1, keepdims=True)
        return (t - mu) * jax.lax.rsqrt(var + 1e-5) * g + b

    h = x.reshape(B, L, token_encoder_dim) @ params["in_w"].T + params["in_b"]
    for (w_qkv, b_qkv, g1, be1, w1, bb1, w2, bb2, g2, be2) in params["layers"]:
        D = h.shape[-1]
        hd = D // nhead
        qkv = (h @ w_qkv.T + b_qkv).reshape(B, L, 3, nhead, hd)
        q = jnp.moveaxis(qkv[:, :, 0], 2, 1)     # (B, H, L, hd)
        k = jnp.moveaxis(qkv[:, :, 1], 2, 1)
        v = jnp.moveaxis(qkv[:, :, 2], 2, 1)
        s = jnp.einsum('bhqd,bhkd->bhqk', q, k) / math.sqrt(hd)
        p = jax.nn.softmax(s, axis=-1)
        ctx = jnp.einsum('bhqk,bhkd->bhqd', p, v)
        attn = jnp.moveaxis(ctx, 1, 2).reshape(B, L, D)
        h1 = ln(h + attn, g1, be1)
        f = jnp.maximum(h1 @ w1.T + bb1, 0.0) @ w2.T + bb2
        h = ln(h1 + f, g2, be2)
    out = h @ params["out_w"].T + params["out_b"]
    return out.reshape(B, -1)


# ----------------------------------------------------------------------------
if __name__ == "__main__":
    # Small, module-consistent shapes.
    B = 2
    token_encoder_dim = 16
    d_model = 32
    output_dim = 8
    nhead = 4
    num_layers = 2
    L = 8

    key = jax.random.PRNGKey(0)
    k_x, k_p = jax.random.split(key)
    x = jax.random.normal(k_x, (B, L * token_encoder_dim), jnp.float32)

    params = init_params(k_p, token_encoder_dim, d_model, output_dim,
                         nhead, num_layers)

    out = fast_self_attention_encoder(
        x, params, token_encoder_dim=token_encoder_dim, nhead=nhead)
    out = jax.block_until_ready(out)

    assert out.shape == (B, L * output_dim), out.shape
    assert bool(jnp.all(jnp.isfinite(out))), "non-finite values in output"

    # Loose-tolerance parity check (kernel uses bf16 matmuls + approx reciprocal).
    ref = _reference_forward(x, params, token_encoder_dim, nhead)
    err = float(jnp.max(jnp.abs(out - ref)))
    assert err < 1e-1, f"kernel/reference mismatch: max|diff|={err}"

    print("KERNEL_OK")
</pallas_src>

<mosaic_0001>
module attributes {stable_mosaic.version = 11 : i64} {
  func.func @_linear_kernel(%arg0: i32, %arg1: memref<16x16xf32, #tpu.memory_space<vmem>>, %arg2: memref<16x128xf32, #tpu.memory_space<vmem>>, %arg3: memref<1x128xf32, #tpu.memory_space<vmem>>, %arg4: memref<16x128xf32, #tpu.memory_space<vmem>>) attributes {dimension_semantics = [#tpu.dimension_semantics<parallel>], iteration_bounds = array<i64: 1>, scalar_prefetch = 0 : i64, scratch_operands = 0 : i64, tpu.core_type = #tpu.core_type<tc>, window_params = [{transform_indices = @transform_0, window_bounds = array<i64: 16, 16>}, {pipeline_mode = #tpu.pipeline_mode<synchronous>, transform_indices = @transform_1, window_bounds = array<i64: 16, 128>}, {pipeline_mode = #tpu.pipeline_mode<synchronous>, transform_indices = @transform_2, window_bounds = array<i64: 1, 128>}, {transform_indices = @transform_3, window_bounds = array<i64: 16, 128>}]} {
    %c0 = arith.constant 0 : index
    %c0_0 = arith.constant 0 : index
    %0 = vector.load %arg1[%c0, %c0_0] : memref<16x16xf32, #tpu.memory_space<vmem>>, vector<16x16xf32>
    %c0_1 = arith.constant 0 : index
    %c0_2 = arith.constant 0 : index
    %1 = vector.load %arg2[%c0_1, %c0_2] : memref<16x128xf32, #tpu.memory_space<vmem>>, vector<16x128xf32>
    %cst = arith.constant dense<0.000000e+00> : vector<16x128xf32>
    %2 = tpu.matmul %0, %1, %cst {dimension_numbers = #tpu.dot_dimension_numbers<[1], [0], [0], [1], [0, 0, 1, 1], [], []>} : vector<16x16xf32>, vector<16x128xf32>, vector<16x128xf32> -> vector<16x128xf32>
    %c0_3 = arith.constant 0 : index
    %c0_4 = arith.constant 0 : index
    %3 = vector.load %arg3[%c0_3, %c0_4] : memref<1x128xf32, #tpu.memory_space<vmem>>, vector<1x128xf32>
    %4 = vector.broadcast %3 : vector<1x128xf32> to vector<16x128xf32>
    %5 = arith.addf %2, %4 : vector<16x128xf32>
    %c0_5 = arith.constant 0 : index
    %c0_6 = arith.constant 0 : index
    %6 = vector.load %arg4[%c0_5, %c0_6] : memref<16x128xf32, #tpu.memory_space<vmem>>, vector<16x128xf32>
    tpu.vector_store %arg4[%c0_5, %c0_6], %5 {strides = array<i32>} : memref<16x128xf32, #tpu.memory_space<vmem>>, vector<16x128xf32>,
    return
  }
  func.func @transform_0(%arg0: i32) -> (i32, i32) {
    %c0_i32 = arith.constant 0 : i32
    %c0_i32_0 = arith.constant 0 : i32
    return %arg0, %c0_i32 : i32, i32
  }
  func.func @transform_1(%arg0: i32) -> (i32, i32) {
    %c0_i32 = arith.constant 0 : i32
    %c0_i32_0 = arith.constant 0 : i32
    %c0_i32_1 = arith.constant 0 : i32
    return %c0_i32, %c0_i32_0 : i32, i32
  }
  func.func @transform_2(%arg0: i32) -> (i32, i32) {
    %c0_i32 = arith.constant 0 : i32
    %c0_i32_0 = arith.constant 0 : i32
    %c0_i32_1 = arith.constant 0 : i32
    return %c0_i32, %c0_i32_0 : i32, i32
  }
  func.func @transform_3(%arg0: i32) -> (i32, i32) {
    %c0_i32 = arith.constant 0 : i32
    %c0_i32_0 = arith.constant 0 : i32
    return %arg0, %c0_i32 : i32, i32
  }
}

</mosaic_0001>

<bundles_post_ra>
// kernel: tpu_custom_call.1
= control target key start
LH: loop header
LB: loop body
LE: loop exit
PB: predicated region body
PF: predicated region fallthrough
CT: control target
= control target key end

     0   :  { %8 = vsyncpa [#allocation3], 0  ;;  %s287_s0 = inlined_call_operand.hbm [shape: f32[16,16], index: 0, kind: input, shape index: {}]   ;;  %s288_s1 = inlined_call_operand.hbm [shape: f32[16,128], index: 1, kind: input, shape index: {}]   ;;  %s289_s2 = inlined_call_operand.vmem [shape: f32[1,128], index: 2, kind: input, shape index: {}]   ;;  %s290_s3 = inlined_call_operand.hbm [shape: f32[16,128], index: 3, kind: output, shape index: {}]  }
   0x1   :  { %9 = vsyncpa [#allocation6], 0 }
   0x2   :  { %10 = vsyncpa [#allocation4], 0  ;;  %s241_s12 = smov [#allocation2]  }
   0x3   :  { %s16_s13 = sshll.u32 %s241_s12, 4  ;;  %s17_s13 = int_to_ptr.vmem [resolvable:$true] %s16_s13 }
   0x4   :  { %s183_s14 = scalar_lea.vmem %s17_s13, 256  ;;  %p188_p1 = scmp.lt.s32.totalorder %s17_s13, %s17_s13 }
   0x5   :  { %p184_p0 = scmp.ne.s32.totalorder %s17_s13, %s183_s14  ;;  %p189_p2 = scmp.lt.s32.totalorder %s183_s14, %s183_s14 }
   0x7   :  { %p190_p3 = por %p189_p2, %p188_p1 }
   0x9   :  { %p191_p4 = pnand %p190_p3, %p184_p0 }
   0xb   :  { %194 = shalt.err (!%p191_p4)
}
   0xc   :  { %s242_s15 = smov 128   ;;  %s243_s16 = smov 8  }
   0xd   :  { %22 = dma.hbm_to_vmem [thread:$0]  %s287_s0, 256, %s17_s13, [#allocation3], %s242_s15, %s242_s15, %s243_s16  }
   0xe   :  { %s244_s19 = smov [#allocation5]  }
   0xf   :  { %s28_s20 = sshll.u32 %s244_s19, 4  ;;  %s29_s20 = int_to_ptr.vmem [resolvable:$true] %s28_s20 }
  0x10   :  { %s203_s21 = scalar_lea.vmem %s29_s20, 256  ;;  %p208_p6 = scmp.lt.s32.totalorder %s29_s20, %s29_s20 }
  0x11   :  { %p204_p5 = scmp.ne.s32.totalorder %s29_s20, %s203_s21  ;;  %p209_p7 = scmp.lt.s32.totalorder %s203_s21, %s203_s21 }
  0x13   :  { %p210_p8 = por %p209_p7, %p208_p6 }
  0x15   :  { %p211_p9 = pnand %p210_p8, %p204_p5 }
  0x17   :  { %214 = shalt.err (!%p211_p9)
}
  0x18   :  { %34 = dma.hbm_to_vmem [thread:$0]  %s288_s1, 256, %s29_s20, [#allocation6], %s242_s15, %s242_s15, %s243_s16  }
  0x19   :  { %235 = dma.done.wait [#allocation3], 256  }
  0x1a   :  { %236 = vsyncadd [#allocation3], 4294967040 }
  0x1b   :  { %237 = dma.done.wait [#allocation6], 256  }
  0x1c   :  { %238 = vsyncadd [#allocation6], 4294967040  ;;  %vm54_vm0 = vcmask 130048   ;;  %v46_v0 = vld [vmem:[#allocation5 + $0x8] sm:$0xff]  ;;  %v45_v1 = vld [vmem:[#allocation5] sm:$0xff]  ;;  %s245_s1 = smov [#allocation7]  }
  0x1d   :  { %v43_v2 = vld [vmem:[#allocation2] sm:$0xff]  ;;  %163 = vmatprep.subr.mxu0 %v46_v0  ;;  %v44_v3 = vld [vmem:[#allocation2 + $0x8] sm:$0xff]  ;;  %s143_s25 = sshll.u32 %s245_s1, 4  ;;  %s144_s25 = int_to_ptr.vmem [resolvable:$true] %s143_s25 }
  0x1e   :  { %167 = vmatprep.mubr.msk.f32.mxu0 %vm54_vm0, %v43_v2  ;;  %164 = vmatpush3.msra.mxu0 %v46_v0  ;;  %v156_v4 = vld [vmem:[%s289_s2] ss:$0 sm:$0xff]  ;;  %s215_s26 = scalar_lea.vmem %s144_s25, 256  ;;  %p220_p11 = scmp.lt.s32.totalorder %s144_s25, %s144_s25 }
  0x1f   :  { %165 = vmatprep.subr.mxu0 %v45_v1  ;;  %p216_p10 = scmp.ne.s32.totalorder %s144_s25, %s215_s26  ;;  %p221_p12 = scmp.lt.s32.totalorder %s215_s26, %s215_s26 }
  0x20   :  { %166 = vmatpush3.msra.mxu0 %v45_v1 }
  0x21   :  { %168 = vmatmul.mubr.msk.f32.vlgmr.msra.gmra.mxu0 %vm54_vm0, %v44_v3  ;;  %p222_p13 = por %p221_p12, %p220_p11 }
  0x23   :  { %p223_p0 = pnand %p222_p13, %p216_p10 }
  0xe1   :  { %v169_v5 = vpop.f32.mrf.mxu0 }
  0xe2   :  { %v133_v6 = vadd.f32 %v169_v5, %v156_v4 }
  0xe3   :  { %v127_v7 = vpop.f32.mrf.mxu0 }
  0xe4   :  { %137 = vst [vmem:[#allocation7 + $0x8] sm:$0xff] %v133_v6  ;;  %v128_v8 = vadd.f32 %v156_v4, %v127_v7 }
  0xe6   :  { %136 = vst [vmem:[#allocation7] sm:$0xff] %v128_v8 }
  0xe7   :  { %226 = shalt.err (!%p223_p0)
}
  0xe8   :  { %149 = dma.vmem_to_hbm [thread:$0]  %s144_s25, 256, %s290_s3, [#allocation4], %s242_s15, %s242_s15, %s243_s16  }
  0xe9   :  { %239 = dma.done.wait [#allocation4], 256  }
  0xea   :  { %240 = vsyncadd [#allocation4], 4294967040 }
  0xeb   :  { %153 = vsyncpa [#allocation3], 1 }
  0xec   :  { %154 = vsyncpa [#allocation6], 1 }
  0xed   :  { %155 = vsyncpa [#allocation4], 1 }

</bundles_post_ra>
